<compile_context>
chip_gen: v6e
topology: v6e:2x2x1
jax: 0.10.0
libtpu: 0.0.40
codegen_flags: <defaults>
</compile_context>

<pallas_src>
import functools

import jax
import jax.numpy as jnp
from jax.experimental import pallas as pl
from jax.experimental.pallas import tpu as pltpu


def _focal_kernel(x_ref, t_ref, alpha_ref, out_ref, acc_f_ref, acc_a_ref,
                  *, num_class, gamma, smooth):
    j = pl.program_id(1)

    @pl.when(j == 0)
    def _():
        acc_f_ref[...] = jnp.zeros_like(acc_f_ref)
        acc_a_ref[...] = jnp.zeros_like(acc_a_ref)

    t = t_ref[0, :, :]                                   # (tile_r, L) int32

    # Unrolled pass over the (small) class axis; every op below is an
    # elementwise VPU/EUP op on a lane/sublane-dense (tile_r, L) slab.
    rows = [x_ref[0, c, :, :].astype(jnp.float32) for c in range(num_class)]

    m = rows[0]                                          # per-position max
    for c in range(1, num_class):
        m = jnp.maximum(m, rows[c])

    se = jnp.zeros_like(m)    # softmax denominator: sum_c exp(x_c - m)
    e_t = jnp.zeros_like(m)   # numerator at the target class
    a_t = jnp.zeros_like(m)   # alpha[target]
    for c in range(num_class):
        e_c = jnp.exp(rows[c] - m)
        se = se + e_c
        sel = t == c
        e_t = jnp.where(sel, e_c, e_t)
        a_t = jnp.where(sel, alpha_ref[c], a_t)          # scalar SMEM read

    # Exact reciprocal: costs a handful of VPU ops in an HBM-bound kernel and
    # keeps the result within the reference rtol (approx vrcp would not).
    p_t = e_t * pl.reciprocal(se, approx=False)
    if smooth is not None:
        # torch clamps the one-hot key; since sum_c p_c == 1 this is
        # pt = smooth + (1 - 2*smooth) * p_t.
        p_t = smooth + (1.0 - 2.0 * smooth) * p_t
    pt = p_t + 1e-10                                     # torch epsilon
    logpt = jnp.log(pt)

    d = 1.0 - pt
    g = float(gamma)
    if g == int(g) and g >= 0:
        powt = jnp.ones_like(d)
        for _ in range(int(g)):                          # gamma=2 -> d*d
            powt = powt * d
    else:
        powt = jnp.maximum(d, 0.0) ** g                  # avoid pow(neg) NaN

    acc_f_ref[...] += powt * logpt
    acc_a_ref[...] += a_t

    @pl.when(j == pl.num_programs(1) - 1)
    def _():
        sf = jnp.sum(acc_f_ref[...])                     # one reduce per row n
        sa = jnp.sum(acc_a_ref[...])
        sub = jax.lax.broadcasted_iota(jnp.int32, out_ref.shape[1:], 0)
        # Row 0 carries sum_f, row 1 carries sum_a (full-tile store).
        out_ref[0, :, :] = jnp.where(sub == 0, sf, jnp.where(sub == 1, sa, 0.0))


def _pick_tile_rows(r_total, num_class, *, desired=512,
                    max_block_bytes=4 * 1024 * 1024):
    """Sublane rows (of 128 lanes) per grid step: largest multiple of 8 that
    divides r_total, fits a modest VMEM budget (safe for v7x's smaller VMEM,
    double-buffered) and is <= `desired`; otherwise the full extent."""
    cap = min(desired, max(8, max_block_bytes // (num_class * 128 * 4)))
    cap -= cap % 8
    for cand in range(cap, 0, -8):
        if r_total % cand == 0:
            return cand
    return r_total


def multi_focal_loss(x_nchw, target, alpha, *, gamma=2.0, smooth=None,
                     size_average=True):
    """x_nchw: (N, C, H, W) float; target: (N, H, W) int; alpha: (C,) float."""
    N, C, H, W = x_nchw.shape
    HW = H * W
    M = N * HW

    # Fold the spatial axis onto (R, 128) when possible so vregs are full;
    # plain row-major reshapes only (no transpose, no extra HBM pass).
    if HW % 128 == 0:
        R, L = HW // 128, 128
    else:
        R, L = 1, HW          # fallback: whole per-image strip, 1 sublane row
    tile_r = _pick_tile_rows(R, C)
    nb = R // tile_r

    x_b = x_nchw.reshape(N, C, R, L)
    t_b = target.reshape(N, R, L).astype(jnp.int32)
    alpha_vec = alpha.reshape(C).astype(jnp.float32)

    kernel = functools.partial(
        _focal_kernel, num_class=C, gamma=float(gamma),
        smooth=None if smooth is None else float(smooth))

    partials = pl.pallas_call(
        kernel,
        out_shape=jax.ShapeDtypeStruct((N, 8, 128), jnp.float32),
        grid_spec=pltpu.PrefetchScalarGridSpec(
            num_scalar_prefetch=0,
            grid=(N, nb),                        # reduction (spatial) axis last
            in_specs=[
                pl.BlockSpec((1, C, tile_r, L), lambda n, j: (n, 0, j, 0)),
                pl.BlockSpec((1, tile_r, L), lambda n, j: (n, j, 0)),
                pl.BlockSpec(memory_space=pltpu.SMEM),   # alpha as SMEM scalars
            ],
            out_specs=pl.BlockSpec((1, 8, 128), lambda n, j: (n, 0, 0)),
            scratch_shapes=[
                pltpu.VMEM((tile_r, L), jnp.float32),  # running focal-term sum
                pltpu.VMEM((tile_r, L), jnp.float32),  # running alpha[target] sum
            ],
        ),
        compiler_params=pltpu.CompilerParams(
            # Batch axis is parallel (private accumulators + private output
            # tile per n) so v7x's two TensorCores can split it; the spatial
            # tile axis carries the accumulator and stays arbitrary.
            dimension_semantics=("parallel", "arbitrary")),
    )(x_b, t_b, alpha_vec)

    sum_f = jnp.sum(partials[:, 0, 0])
    sum_a = jnp.sum(partials[:, 1, 0])
    norm = (1.0 / (M * M)) if size_average else 1.0
    return -(sum_a * sum_f) * norm


def _reference_loss(x_nchw, target, alpha, gamma=2.0, smooth=None,
                    size_average=True):
    """Pure-JAX replica of the torch forward (incl. its broadcasting quirk)."""
    N, C, H, W = x_nchw.shape
    logit = jax.nn.softmax(x_nchw.astype(jnp.float32), axis=1)
    logit = jnp.transpose(logit.reshape(N, C, -1), (0, 2, 1)).reshape(-1, C)
    t = target.reshape(-1)
    one_hot = jax.nn.one_hot(t, C, dtype=jnp.float32)
    if smooth is not None:
        one_hot = jnp.clip(one_hot, smooth, 1.0 - smooth)
    pt = (one_hot * logit).sum(1) + 1e-10
    logpt = jnp.log(pt)
    a = alpha.reshape(-1)[t]                          # (M,)
    f = ((1.0 - pt) ** gamma) * logpt                 # (M,)
    loss_mat = -a[:, None, None] * f[None, None, :]   # (M,1,M) torch broadcast
    return loss_mat.mean() if size_average else loss_mat.sum()


if __name__ == "__main__":
    key = jax.random.PRNGKey(0)
    kx, kt = jax.random.split(key)

    N, C, H, W = 2, 4, 16, 16            # num_class = 4
    x = jax.random.normal(kx, (N, C, H, W), dtype=jnp.float32)
    target = jax.random.randint(kt, (N, H, W), 0, C, dtype=jnp.int32)

    # Deterministic "alpha" parameter (list branch of __init__: normalized).
    alpha = jnp.array([1.0, 2.0, 3.0, 4.0], dtype=jnp.float32)
    alpha = alpha / alpha.sum()

    checks = [
        dict(gamma=2.0, smooth=None, size_average=True),
        dict(gamma=2.0, smooth=None, size_average=False),
        dict(gamma=2.0, smooth=0.1, size_average=True),
    ]
    for cfg in checks:
        got = jax.block_until_ready(multi_focal_loss(x, target, alpha, **cfg))
        want = _reference_loss(x, target, alpha, **cfg)
        assert jnp.allclose(got, want, rtol=5e-5, atol=1e-7), (cfg, got, want)

    print("KERNEL_OK")
</pallas_src>

<mosaic_0001>
module attributes {stable_mosaic.version = 11 : i64} {
  func.func @_focal_kernel(%arg0: i32, %arg1: i32, %arg2: memref<1x4x2x128xf32, #tpu.memory_space<vmem>>, %arg3: memref<1x2x128xi32, #tpu.memory_space<vmem>>, %arg4: memref<4xf32, #tpu.memory_space<smem>>, %arg5: memref<1x8x128xf32, #tpu.memory_space<vmem>>, %arg6: memref<2x128xf32, #tpu.memory_space<vmem>>, %arg7: memref<2x128xf32, #tpu.memory_space<vmem>>) attributes {dimension_semantics = [#tpu.dimension_semantics<parallel>, #tpu.dimension_semantics<arbitrary>], iteration_bounds = array<i64: 2, 1>, scalar_prefetch = 0 : i64, scratch_operands = 2 : i64, tpu.core_type = #tpu.core_type<tc>, window_params = [{transform_indices = @transform_0, window_bounds = array<i64: 1, 4, 2, 128>}, {transform_indices = @transform_1, window_bounds = array<i64: 1, 2, 128>}, {transform_indices = @transform_2, window_bounds = array<i64: 4>}, {transform_indices = @transform_3, window_bounds = array<i64: 1, 8, 128>}]} {
    %c0_i32 = arith.constant 0 : i32
    %0 = arith.cmpi eq, %arg1, %c0_i32 : i32
    %1 = arith.extui %0 : i1 to i32
    %c0_i32_0 = arith.constant 0 : i32
    %2 = arith.cmpi ne, %1, %c0_i32_0 : i32
    scf.if %2 {
      %cst_36 = arith.constant 0.000000e+00 : f32
      %75 = vector.broadcast %cst_36 : f32 to vector<2x128xf32>
      %c0_37 = arith.constant 0 : index
      %c0_38 = arith.constant 0 : index
      %76 = vector.load %arg6[%c0_37, %c0_38] : memref<2x128xf32, #tpu.memory_space<vmem>>, vector<2x128xf32>
      tpu.vector_store %arg6[%c0_37, %c0_38], %75 {strides = array<i32>} : memref<2x128xf32, #tpu.memory_space<vmem>>, vector<2x128xf32>,
      %cst_39 = arith.constant 0.000000e+00 : f32
      %77 = vector.broadcast %cst_39 : f32 to vector<2x128xf32>
      %c0_40 = arith.constant 0 : index
      %c0_41 = arith.constant 0 : index
      %78 = vector.load %arg7[%c0_40, %c0_41] : memref<2x128xf32, #tpu.memory_space<vmem>>, vector<2x128xf32>
      tpu.vector_store %arg7[%c0_40, %c0_41], %77 {strides = array<i32>} : memref<2x128xf32, #tpu.memory_space<vmem>>, vector<2x128xf32>,
    } else {
    }
    %c0 = arith.constant 0 : index
    %c0_1 = arith.constant 0 : index
    %c0_2 = arith.constant 0 : index
    %3 = vector.load %arg3[%c0, %c0_1, %c0_2] : memref<1x2x128xi32, #tpu.memory_space<vmem>>, vector<1x2x128xi32>
    %4 = vector.shape_cast %3 : vector<1x2x128xi32> to vector<2x128xi32>
    %c0_3 = arith.constant 0 : index
    %c0_4 = arith.constant 0 : index
    %c0_5 = arith.constant 0 : index
    %c0_6 = arith.constant 0 : index
    %5 = vector.load %arg2[%c0_3, %c0_4, %c0_5, %c0_6] : memref<1x4x2x128xf32, #tpu.memory_space<vmem>>, vector<1x1x2x128xf32>
    %6 = vector.shape_cast %5 : vector<1x1x2x128xf32> to vector<2x128xf32>
    %c0_7 = arith.constant 0 : index
    %c1 = arith.constant 1 : index
    %c0_8 = arith.constant 0 : index
    %c0_9 = arith.constant 0 : index
    %7 = vector.load %arg2[%c0_7, %c1, %c0_8, %c0_9] : memref<1x4x2x128xf32, #tpu.memory_space<vmem>>, vector<1x1x2x128xf32>
    %8 = vector.shape_cast %7 : vector<1x1x2x128xf32> to vector<2x128xf32>
    %c0_10 = arith.constant 0 : index
    %c2 = arith.constant 2 : index
    %c0_11 = arith.constant 0 : index
    %c0_12 = arith.constant 0 : index
    %9 = vector.load %arg2[%c0_10, %c2, %c0_11, %c0_12] : memref<1x4x2x128xf32, #tpu.memory_space<vmem>>, vector<1x1x2x128xf32>
    %10 = vector.shape_cast %9 : vector<1x1x2x128xf32> to vector<2x128xf32>
    %c0_13 = arith.constant 0 : index
    %c3 = arith.constant 3 : index
    %c0_14 = arith.constant 0 : index
    %c0_15 = arith.constant 0 : index
    %11 = vector.load %arg2[%c0_13, %c3, %c0_14, %c0_15] : memref<1x4x2x128xf32, #tpu.memory_space<vmem>>, vector<1x1x2x128xf32>
    %12 = vector.shape_cast %11 : vector<1x1x2x128xf32> to vector<2x128xf32>
    %13 = arith.maximumf %6, %8 : vector<2x128xf32>
    %14 = arith.maximumf %13, %10 : vector<2x128xf32>
    %15 = arith.maximumf %14, %12 : vector<2x128xf32>
    %cst = arith.constant 0.000000e+00 : f32
    %16 = vector.broadcast %cst : f32 to vector<2x128xf32>
    %cst_16 = arith.constant 0.000000e+00 : f32
    %17 = vector.broadcast %cst_16 : f32 to vector<2x128xf32>
    %cst_17 = arith.constant 0.000000e+00 : f32
    %18 = vector.broadcast %cst_17 : f32 to vector<2x128xf32>
    %19 = arith.subf %6, %15 : vector<2x128xf32>
    %20 = math.exp %19 : vector<2x128xf32>
    %21 = arith.addf %16, %20 : vector<2x128xf32>
    %c0_i32_18 = arith.constant 0 : i32
    %22 = vector.broadcast %c0_i32_18 : i32 to vector<2x128xi32>
    %23 = arith.cmpi eq, %4, %22 : vector<2x128xi32>
    %24 = arith.select %23, %20, %17 : vector<2x128xi1>, vector<2x128xf32>
    %c0_19 = arith.constant 0 : index
    %25 = memref.load %arg4[%c0_19] : memref<4xf32, #tpu.memory_space<smem>>
    %26 = vector.broadcast %25 : f32 to vector<2x128xf32>
    %27 = arith.select %23, %26, %18 : vector<2x128xi1>, vector<2x128xf32>
    %28 = arith.subf %8, %15 : vector<2x128xf32>
    %29 = math.exp %28 : vector<2x128xf32>
    %30 = arith.addf %21, %29 : vector<2x128xf32>
    %c1_i32 = arith.constant 1 : i32
    %31 = vector.broadcast %c1_i32 : i32 to vector<2x128xi32>
    %32 = arith.cmpi eq, %4, %31 : vector<2x128xi32>
    %33 = arith.select %32, %29, %24 : vector<2x128xi1>, vector<2x128xf32>
    %c1_20 = arith.constant 1 : index
    %34 = memref.load %arg4[%c1_20] : memref<4xf32, #tpu.memory_space<smem>>
    %35 = vector.broadcast %34 : f32 to vector<2x128xf32>
    %36 = arith.select %32, %35, %27 : vector<2x128xi1>, vector<2x128xf32>
    %37 = arith.subf %10, %15 : vector<2x128xf32>
    %38 = math.exp %37 : vector<2x128xf32>
    %39 = arith.addf %30, %38 : vector<2x128xf32>
    %c2_i32 = arith.constant 2 : i32
    %40 = vector.broadcast %c2_i32 : i32 to vector<2x128xi32>
    %41 = arith.cmpi eq, %4, %40 : vector<2x128xi32>
    %42 = arith.select %41, %38, %33 : vector<2x128xi1>, vector<2x128xf32>
    %c2_21 = arith.constant 2 : index
    %43 = memref.load %arg4[%c2_21] : memref<4xf32, #tpu.memory_space<smem>>
    %44 = vector.broadcast %43 : f32 to vector<2x128xf32>
    %45 = arith.select %41, %44, %36 : vector<2x128xi1>, vector<2x128xf32>
    %46 = arith.subf %12, %15 : vector<2x128xf32>
    %47 = math.exp %46 : vector<2x128xf32>
    %48 = arith.addf %39, %47 : vector<2x128xf32>
    %c3_i32 = arith.constant 3 : i32
    %49 = vector.broadcast %c3_i32 : i32 to vector<2x128xi32>
    %50 = arith.cmpi eq, %4, %49 : vector<2x128xi32>
    %51 = arith.select %50, %47, %42 : vector<2x128xi1>, vector<2x128xf32>
    %c3_22 = arith.constant 3 : index
    %52 = memref.load %arg4[%c3_22] : memref<4xf32, #tpu.memory_space<smem>>
    %53 = vector.broadcast %52 : f32 to vector<2x128xf32>
    %54 = arith.select %50, %53, %45 : vector<2x128xi1>, vector<2x128xf32>
    %55 = tpu.reciprocal %48 : vector<2x128xf32> -> vector<2x128xf32>
    %56 = arith.mulf %51, %55 : vector<2x128xf32>
    %cst_23 = arith.constant 1.000000e-10 : f32
    %57 = vector.broadcast %cst_23 : f32 to vector<2x128xf32>
    %58 = arith.addf %56, %57 : vector<2x128xf32>
    %59 = math.log %58 : vector<2x128xf32>
    %cst_24 = arith.constant 1.000000e+00 : f32
    %60 = vector.broadcast %cst_24 : f32 to vector<2x128xf32>
    %61 = arith.subf %60, %58 : vector<2x128xf32>
    %cst_25 = arith.constant 1.000000e+00 : f32
    %62 = vector.broadcast %cst_25 : f32 to vector<2x128xf32>
    %63 = arith.mulf %62, %61 : vector<2x128xf32>
    %64 = arith.mulf %63, %61 : vector<2x128xf32>
    %c0_26 = arith.constant 0 : index
    %c0_27 = arith.constant 0 : index
    %65 = vector.load %arg6[%c0_26, %c0_27] : memref<2x128xf32, #tpu.memory_space<vmem>>, vector<2x128xf32>
    %66 = arith.mulf %64, %59 : vector<2x128xf32>
    %67 = arith.addf %65, %66 : vector<2x128xf32>
    %c0_28 = arith.constant 0 : index
    %c0_29 = arith.constant 0 : index
    %68 = vector.load %arg6[%c0_28, %c0_29] : memref<2x128xf32, #tpu.memory_space<vmem>>, vector<2x128xf32>
    tpu.vector_store %arg6[%c0_28, %c0_29], %67 {strides = array<i32>} : memref<2x128xf32, #tpu.memory_space<vmem>>, vector<2x128xf32>,
    %c0_30 = arith.constant 0 : index
    %c0_31 = arith.constant 0 : index
    %69 = vector.load %arg7[%c0_30, %c0_31] : memref<2x128xf32, #tpu.memory_space<vmem>>, vector<2x128xf32>
    %70 = arith.addf %69, %54 : vector<2x128xf32>
    %c0_32 = arith.constant 0 : index
    %c0_33 = arith.constant 0 : index
    %71 = vector.load %arg7[%c0_32, %c0_33] : memref<2x128xf32, #tpu.memory_space<vmem>>, vector<2x128xf32>
    tpu.vector_store %arg7[%c0_32, %c0_33], %70 {strides = array<i32>} : memref<2x128xf32, #tpu.memory_space<vmem>>, vector<2x128xf32>,
    %c0_i32_34 = arith.constant 0 : i32
    %72 = arith.cmpi eq, %arg1, %c0_i32_34 : i32
    %73 = arith.extui %72 : i1 to i32
    %c0_i32_35 = arith.constant 0 : i32
    %74 = arith.cmpi ne, %73, %c0_i32_35 : i32
    scf.if %74 {
      %c0_36 = arith.constant 0 : index
      %c0_37 = arith.constant 0 : index
      %75 = vector.load %arg6[%c0_36, %c0_37] : memref<2x128xf32, #tpu.memory_space<vmem>>, vector<2x128xf32>
      %76 = vector.shape_cast %75 : vector<2x128xf32> to vector<1x2x128xf32>
      %cst_38 = arith.constant dense<0.000000e+00> : vector<1xf32>
      %77 = vector.multi_reduction <add>, %76, %cst_38 [1, 2] : vector<1x2x128xf32> to vector<1xf32>
      %78 = vector.shape_cast %77 : vector<1xf32> to vector<1x1x1xf32>
      %79 = vector.extract %78[0, 0, 0] : f32 from vector<1x1x1xf32>
      %c0_39 = arith.constant 0 : index
      %c0_40 = arith.constant 0 : index
      %80 = vector.load %arg7[%c0_39, %c0_40] : memref<2x128xf32, #tpu.memory_space<vmem>>, vector<2x128xf32>
      %81 = vector.shape_cast %80 : vector<2x128xf32> to vector<1x2x128xf32>
      %cst_41 = arith.constant dense<0.000000e+00> : vector<1xf32>
      %82 = vector.multi_reduction <add>, %81, %cst_41 [1, 2] : vector<1x2x128xf32> to vector<1xf32>
      %83 = vector.shape_cast %82 : vector<1xf32> to vector<1x1x1xf32>
      %84 = vector.extract %83[0, 0, 0] : f32 from vector<1x1x1xf32>
      %85 = tpu.iota {dimensions = array<i32: 0>} : vector<8x128xi32>
      %c0_i32_42 = arith.constant 0 : i32
      %86 = vector.broadcast %c0_i32_42 : i32 to vector<8x128xi32>
      %87 = arith.cmpi eq, %85, %86 : vector<8x128xi32>
      %c1_i32_43 = arith.constant 1 : i32
      %88 = vector.broadcast %c1_i32_43 : i32 to vector<8x128xi32>
      %89 = arith.cmpi eq, %85, %88 : vector<8x128xi32>
      %cst_44 = arith.constant 0.000000e+00 : f32
      %90 = vector.broadcast %84 : f32 to vector<8x128xf32>
      %91 = vector.broadcast %cst_44 : f32 to vector<8x128xf32>
      %92 = arith.select %89, %90, %91 : vector<8x128xi1>, vector<8x128xf32>
      %93 = vector.broadcast %79 : f32 to vector<8x128xf32>
      %94 = arith.select %87, %93, %92 : vector<8x128xi1>, vector<8x128xf32>
      %c0_45 = arith.constant 0 : index
      %c0_46 = arith.constant 0 : index
      %c0_47 = arith.constant 0 : index
      %95 = vector.load %arg5[%c0_45, %c0_46, %c0_47] : memref<1x8x128xf32, #tpu.memory_space<vmem>>, vector<1x8x128xf32>
      %96 = vector.shape_cast %95 : vector<1x8x128xf32> to vector<8x128xf32>
      %97 = vector.shape_cast %94 : vector<8x128xf32> to vector<1x8x128xf32>
      tpu.vector_store %arg5[%c0_45, %c0_46, %c0_47], %97 {strides = array<i32>} : memref<1x8x128xf32, #tpu.memory_space<vmem>>, vector<1x8x128xf32>,
    } else {
    }
    return
  }
  func.func @transform_0(%arg0: i32, %arg1: i32) -> (i32, i32, i32, i32) {
    %c0_i32 = arith.constant 0 : i32
    %c0_i32_0 = arith.constant 0 : i32
    %c0_i32_1 = arith.constant 0 : i32
    return %arg0, %c0_i32, %arg1, %c0_i32_0 : i32, i32, i32, i32
  }
  func.func @transform_1(%arg0: i32, %arg1: i32) -> (i32, i32, i32) {
    %c0_i32 = arith.constant 0 : i32
    %c0_i32_0 = arith.constant 0 : i32
    return %arg0, %arg1, %c0_i32 : i32, i32, i32
  }
  func.func @transform_2(%arg0: i32, %arg1: i32) -> i32 {
    %c0_i32 = arith.constant 0 : i32
    %c0_i32_0 = arith.constant 0 : i32
    return %c0_i32 : i32
  }
  func.func @transform_3(%arg0: i32, %arg1: i32) -> (i32, i32, i32) {
    %c0_i32 = arith.constant 0 : i32
    %c0_i32_0 = arith.constant 0 : i32
    %c0_i32_1 = arith.constant 0 : i32
    return %arg0, %c0_i32, %c0_i32_0 : i32, i32, i32
  }
}

</mosaic_0001>

<bundles_post_ra>
// kernel: tpu_custom_call.1
= control target key start
LH: loop header
LB: loop body
LE: loop exit
PB: predicated region body
PF: predicated region fallthrough
CT: control target
= control target key end

     0   :  { %s1012_s0 = inlined_call_operand.hbm [shape: f32[2,4,2,128], index: 0, kind: input, shape index: {}]   ;;  %s1013_s1 = inlined_call_operand.hbm [shape: s32[2,2,128], index: 1, kind: input, shape index: {}]   ;;  %s1014_s2 = inlined_call_operand.vmem [shape: f32[4], index: 2, kind: input, shape index: {}]   ;;  %s1015_s3 = inlined_call_operand.hbm [shape: f32[2,8,128], index: 3, kind: output, shape index: {}]  }
   0x1   :  { %1018 = sst [smem:[#allocation18_spill]] %s1012_s0 }
   0x2   :  { %1019 = sst [smem:[#allocation19_spill]] %s1014_s2 }
   0x3   :  { %8 = vsyncpa [#allocation5], 0 }
   0x4   :  { %10 = vsyncpa [#allocation5 + $0x1], 0 }
   0x5   :  { %11 = vsyncpa [#allocation9], 0 }
   0x6   :  { %13 = vsyncpa [#allocation9 + $0x1], 0 }
   0x7   :  { %14 = vsyncpa [#allocation7], 0 }
   0x8   :  { %15 = vsyncpa [#allocation6], 0 }
   0x9   :  { %17 = vsyncpa [#allocation6 + $0x1], 0  ;;  %s801_s12 = smov 0   ;;  %s803_s13 = smov 0  }
   0xa   :  { %s805_s14 = smov 0   ;;  %s807_s15 = smov 0  }
   0xb   :  { %s809_s16 = smov 0   ;;  %s811_s17 = smov 0  }
   0xc LB: > { %s490_s18 = sadd.s32 4294967295, %s772_s17   ;;  %s491_s19 = sadd.s32 4294967294, %s772_s17   ;;  %s772_s17 = sphi %s811_s17, %s23_s17   ;;  %s768_s16 = sphi %s809_s16, %s1042_s16   ;;  %s764_s15 = sphi %s807_s15, %s1041_s15   ;;  %s760_s14 = sphi %s805_s14, %s1040_s14   ;;  %s756_s13 = sphi %s803_s13, %s1039_s13   ;;  %s752_s12 = sphi %s801_s12, %s1038_s12  }
   0xd   : > { %s44_s20 = sadd.s32 1, %s760_s14  ;;  %p51_p0 = scmp.ne.s32.totalorder %s760_s14, %s756_s13 }
   0xe   : > { %p52_p1 = scmp.eq.s32.totalorder %s772_s17, 0  ;;  %p57_p2 = scmp.ne.s32.totalorder %s756_s13, %s752_s12 }
   0xf   : > { %p839_p3 = scmp.eq.s32.totalorder %s490_s18, 0  ;;  %p130_p4 = scmp.eq.s32.totalorder %s490_s18, 1 }
  0x10   : > { %p843_p5 = por %p52_p1, %p51_p0  ;;  %p136_p6 = scmp.eq.s32.totalorder %s491_s19, 1 }
  0x11   : > { %p849_p7 = por %p839_p3, %p57_p2  ;;  %p853_p8 = por %p130_p4, %p51_p0 }
  0x12   : > { %p857_p9 = por %p136_p6, %p57_p2  ;;  %p492_p10 = scmp.ge.s32.totalorder %s772_s17, 1 }
  0x13   : > { %s1023_s24 = scalar_select %p853_p8, 1, 0 }
  0x14   : > { %s1024_s25 = scalar_select %p857_p9, 1, 0 }
  0x15   : > { %p143_p11 = scmp.lt.s32.totalorder %s772_s17, 3  ;;  %s1025_s2 = sld [smem:[#allocation19_spill]] }
  0x16   : > { %p546_p0 = scmp.lt.s32.totalorder %s772_s17, 2  ;;  %s35_s5 = sadd.s32 1, %s768_s16 }
  0x17   : > { %p866_p12 = pnand %p492_p10, %p143_p11  ;;  %p887_p6 = scmp.ge.s32.totalorder %s35_s5, 2 }
  0x18   : > { %p876_p2 = pnand %p546_p0, %p843_p5  ;;  %s892_s7 = sand.u32 1, %s760_s14  }
  0x19   : > { %p530_p1 = pneg %p866_p12 }
  0x1b   : > { %s156_s28 = sshll.u32 %s1025_s2, 4  ;;  %p882_p4 = pnand %p530_p1, %p839_p3  ;;  %s157_s28 = int_to_ptr.vmem [resolvable:$true] %s156_s28 }
  0x1c   : > { %s613_s8 = scalar_lea.vmem %s157_s28, 16  ;;  %p621_p13 = scmp.lt.s32.totalorder %s157_s28, %s157_s28 }
  0x1d   : > { %p614_p10 = scmp.ne.s32.totalorder %s157_s28, %s613_s8  ;;  %p615_p5 = pneg %p882_p4 }
  0x1e   : > { %p622_p9 = scmp.lt.s32.totalorder %s613_s8, %s613_s8 }
  0x1f   : > { %p616_p11 = pnand %p615_p5, %p614_p10 }
  0x20   : > { %p623_p1 = por %p622_p9, %p621_p13 }
  0x21   : > { %p617_p0 = pneg %p616_p11 }
  0x23   : > { %p624_p8 = pnand %p623_p1, %p617_p0 }
  0x25   : > { %627 = shalt.err (!%p624_p8)
}
  0x26   : > { %s774_s9 = smov [#allocation10]   ;;  %s1044_s5 = smov (%p887_p6, %s35_s5), 0 }
  0x27   : > { %533 = dma.vmem_to_smem (!%p882_p4), %s157_s28, 16, %s774_s9, [#allocation7]  }
  0x28   : > { %1030 = sst [smem:[#allocation16_spill]] %s1044_s5  ;;  %s495_s10 = sshll.u32 %s892_s7, 3 }
  0x29   : > { %s39_s11 = ssub.s32 %s768_s16, %s1044_s5  ;;  %s515_s18 = sshll.u32 %s768_s16, 7 }
  0x2a   : > { %p42_p8 = scmp.eq.s32.totalorder %s39_s11, 0  ;;  %s1031_s0 = sld [smem:[#allocation18_spill]] }
  0x2b   : > { %s171_s27 = scalar_lea.vmem [#allocation4], %s495_s10  ;;  %s168_s2 = scalar_lea.sflag [#allocation5], %s892_s7 }
  0x2c   : > { %s179_s4 = sshll.u32 %s171_s27, 4  ;;  %p630_p9 = pneg %p876_p2  ;;  %s180_s4 = int_to_ptr.vmem [resolvable:$true] %s179_s4 }
  0x2d   : > { %s912_s8 = scalar_select %p42_p8, %s760_s14, %s44_s20  }
  0x2e   : > { %s641_s28 = scalar_lea.vmem %s180_s4, 128  ;;  %s775_s6 = smov [#allocation4]  }
  0x2f   : > { %1032 = sst [smem:[#allocation17_spill]] %s912_s8  ;;  %p642_p13 = scmp.ne.s32.totalorder %s180_s4, %s641_s28 }
  0x30   : > { %s178_s26 = scalar_lea.hbm %s1031_s0, %s515_s18  ;;  %s646_s9 = sshll.u32 %s775_s6, 4  ;;  %s647_s9 = int_to_ptr.vmem [resolvable:$false] %s646_s9 }
  0x31   : > { %p644_p4 = pnand %p642_p13, %p630_p9  ;;  %s648_s11 = scalar_lea.vmem %s647_s9, 256 }
  0x32   : > { %p649_p10 = scmp.lt.s32.totalorder %s180_s4, %s647_s9  ;;  %p650_p5 = scmp.lt.s32.totalorder %s648_s11, %s641_s28 }
  0x33   : > { %p645_p6 = pneg %p644_p4 }
  0x34   : > { %p651_p11 = por %p650_p5, %p649_p10 }
  0x36   : > { %p652_p0 = pnand %p651_p11, %p645_p6 }
  0x38   : > { %655 = shalt.err (!%p652_p0)
}
  0x39   : > { %s776_s20 = smov 32   ;;  %s777_s10 = smov 2  }
  0x3a   : > { %537 = dma.hbm_to_vmem [thread:$0]  (!%p876_p2), %s178_s26, 128, %s180_s4, %s168_s2, %s776_s20, %s776_s20, %s777_s10  }
  0x3b   : > { %s498_s18 = sshll.u32 %s892_s7, 1  ;;  %s499_s19 = sshll.u32 %s768_s16, 5 }
  0x3c   : > { %s199_s6 = scalar_lea.hbm %s1013_s1, %s499_s19  ;;  %s193_s9 = scalar_lea.vmem [#allocation8], %s498_s18 }
  0x3d   : > { %s201_s28 = sshll.u32 %s193_s9, 4  ;;  %s190_s11 = scalar_lea.sflag [#allocation9], %s892_s7  ;;  %s202_s28 = int_to_ptr.vmem [resolvable:$true] %s201_s28 }
  0x3e   : > { %s669_s0 = scalar_lea.vmem %s202_s28, 32  ;;  %s778_s5 = smov [#allocation8]  }
  0x3f   : > { %p670_p1 = scmp.ne.s32.totalorder %s202_s28, %s669_s0  ;;  %s674_s8 = sshll.u32 %s778_s5, 4  ;;  %s675_s8 = int_to_ptr.vmem [resolvable:$false] %s674_s8 }
  0x40   : > { %s676_s2 = scalar_lea.vmem %s675_s8, 64  ;;  %p677_p4 = scmp.lt.s32.totalorder %s202_s28, %s675_s8 }
  0x41   : > { %p672_p8 = pnand %p670_p1, %p630_p9  ;;  %p678_p6 = scmp.lt.s32.totalorder %s676_s2, %s669_s0 }
  0x43   : > { %p673_p13 = pneg %p672_p8  ;;  %p679_p10 = por %p678_p6, %p677_p4 }
  0x45   : > { %p680_p5 = pnand %p679_p10, %p673_p13 }
  0x47   : > { %683 = shalt.err (!%p680_p5)
}
  0x48   : > { %540 = dma.hbm_to_vmem [thread:$0]  (!%p876_p2), %s199_s6, 32, %s202_s28, %s190_s11  }
  0x49   : > { %210 = sbr.rel (%p866_p12) target bundleno = 385 (0x181), region = 32  ;;  %s936_s7 = sand.u32 (!%p866_p12), 1, %s756_s13  }
  0x4a   : > { %s501_s5 = sshll.u32 (!%p866_p12), %s936_s7, 3  ;;  %s213_s26 = scalar_lea.sflag (!%p866_p12), [#allocation5], %s936_s7 }
  0x4b   : > { %s216_s0 = scalar_lea.vmem (!%p866_p12), [#allocation4], %s501_s5 }
  0x4e   : > { %735 = dma.done.wait (%p849_p7), %s213_s26, 128  }
  0x4f   : > { %737 = vsyncadd (%p849_p7), %s213_s26, 4294967168  ;;  %s502_s29 = sshll.u32 %s936_s7, 1  ;;  %s222_s30 = scalar_lea.sflag [#allocation9], %s936_s7 }
  0x50   : > { %s225_s4 = scalar_lea.vmem [#allocation8], %s502_s29 }
  0x51   : > { %739 = dma.done.wait (%p849_p7), %s222_s30, 32  }
  0x52   : > { %741 = vsyncadd (%p849_p7), %s222_s30, 4294967264 }
  0x53   : > { %743 = dma.done.wait (%p839_p3), [#allocation7], 16  }
  0x54   : > { %745 = vsyncadd (%p839_p3), [#allocation7], 4294967280 }
  0x55   : > { %234 = sfence }
  0x56   : > { %v265_v0 = vld [vmem:[%s216_s0] sm:$0x3]  ;;  %v779_v1 = vmov 0.0   ;;  %v505_v2 = vld [vmem:[%s216_s0 + $0x2] sm:$0x3]  ;;  %s281_s8 = sld [smem:[#allocation10]] }
  0x57   : > { %262 = vst [vmem:[#allocation2] sm:$0x3] %v779_v1  ;;  %v506_v3 = vld [vmem:[%s216_s0 + $0x4] sm:$0x3]  ;;  %263 = vst [vmem:[#allocation3] sm:$0x3] %v779_v1  ;;  %v272_v4 = vmax.f32 %v265_v0, %v505_v2 }
  0x58   : > { %v507_v5 = vld [vmem:[%s216_s0 + $0x6] sm:$0x3]  ;;  %s508_s20 = sld [smem:[#allocation10 + $0x1]]  ;;  %v264_v7 = vld [vmem:[%s225_s4] sm:$0x3]  ;;  %vm329_vm4 = vcmask 1041408  }
  0x59   : > { %v273_v6 = vmax.f32 %v272_v4, %v506_v3  ;;  %s509_s23 = sld [smem:[#allocation10 + $0x2]]  ;;  %vm279_vm0 = vcmp.eq.s32.totalorder %v264_v7, 0  ;;  %vm288_vm1 = vcmp.eq.s32.totalorder %v264_v7, 1  ;;  %vm297_vm2 = vcmp.eq.s32.totalorder %v264_v7, 2  ;;  %s512_s21 = sshll.u32 %s764_s15, 7 }
  0x5a   : > { %s510_s10 = sld [smem:[#allocation10 + $0x3]]  ;;  %vm306_vm3 = vcmp.eq.s32.totalorder %v264_v7, 3  ;;  %s257_s19 = scalar_lea.vmem [#allocation11], %s501_s5 }
  0x5b   : > { %v274_v8 = vmax.f32 %v273_v6, %v507_v5  ;;  %s374_s22 = sshll.u32 %s257_s19, 4  ;;  %s970_s28 = scalar_lea.hbm %s1015_s3, %s512_s21  ;;  %s375_s22 = int_to_ptr.vmem [resolvable:$true] %s374_s22 }
  0x5c   : > { %v282_v13 = vstv %s281_s8  ;;  %s361_s15 = scalar_lea.sflag [#allocation6], %s936_s7  ;;  %s684_s11 = scalar_lea.vmem %s375_s22, 128 }
  0x5d   : > { %v275_v9 = vsub.f32 %v265_v0, %v274_v8  ;;  %v284_v10 = vsub.f32 %v505_v2, %v274_v8  ;;  %v293_v11 = vsub.f32 %v506_v3, %v274_v8  ;;  %v302_v12 = vsub.f32 %v507_v5, %v274_v8  ;;  %p685_p3 = scmp.ne.s32.totalorder %s375_s22, %s684_s11  ;;  %p1033_p7 = scmp.ne.s32.totalorder %s1023_s24, 0 }
  0x5e   : > { %v291_v14 = vstv %s508_s20  ;;  %v283_v20 = vsel %vm279_vm0, %v282_v13, 0.0  ;;  %v322_v23 = vld [vmem:[#allocation3] sm:$0x3]  ;;  %v318_v45 = vld [vmem:[#allocation2] sm:$0x3]  ;;  %v351_v2 = vlaneseq  ;;  %s780_s2 = smov [#allocation11]  }
  0x5f   : > { %v276_v15 = vmul.f32 1.442695, %v275_v9  ;;  %v285_v16 = vmul.f32 1.442695, %v284_v10  ;;  %v294_v17 = vmul.f32 1.442695, %v293_v11  ;;  %v300_v18 = vstv %s509_s23  ;;  %p686_p12 = pnand %p685_p3, %p1033_p7 }
  0x60   : > { %v303_v19 = vmul.f32 1.442695, %v302_v12  ;;  %v309_v21 = vstv %s510_s10  ;;  %v292_v22 = vsel %vm288_vm1, %v291_v14, %v283_v20  ;;  %v352_v3 = vshrl.u32 %v351_v2, 7  ;;  %s688_s5 = sshll.u32 %s780_s2, 4  ;;  %s689_s5 = int_to_ptr.vmem [resolvable:$false] %s688_s5 }
  0x61   : > { %601 = vpow2.f32 %v276_v15  ;;  %v301_v24 = vsel %vm297_vm2, %v300_v18, %v292_v22  ;;  %p687_p2 = pneg %p686_p12  ;;  %s690_s26 = scalar_lea.vmem %s689_s5, 256 }
  0x62   : > { %603 = vpow2.f32 %v285_v16  ;;  %v310_v25 = vsel %vm306_vm3, %v309_v21, %v301_v24  ;;  %vm354_vm5 = vcmp.eq.s32.totalorder %v352_v3, 1  ;;  %vm353_vm6 = vcmp.eq.s32.totalorder %v352_v3, 0  ;;  %p691_p9 = scmp.lt.s32.totalorder %s375_s22, %s689_s5  ;;  %p692_p11 = scmp.lt.s32.totalorder %s690_s26, %s684_s11 }
  0x63   : > { %605 = vpow2.f32 %v294_v17  ;;  %v323_v26 = vadd.f32 %v322_v23, %v310_v25 }
  0x64   : > { %607 = vpow2.f32 %v303_v19  ;;  %p693_p0 = por %p692_p11, %p691_p9 }
  0x65   : > { %324 = vst [vmem:[#allocation3] sm:$0x3] %v323_v26 }
  0x66   : > { %p694_p1 = pnand %p693_p0, %p687_p2 }
  0x6c   : > { %v340_v49 = vld [vmem:[#allocation3] sm:$0x3] }
  0x6d   : > { %v341_v51 = vsel %vm329_vm4, %v340_v49, 0.0 }
  0x6e   : > { %v602_v27 = vpop.eup %601 }
  0x6f   : > { %v604_v28 = vpop.eup %603  ;;  %v280_v34 = vsel %vm279_vm0, %v602_v27, 0.0 }
  0x70   : > { %v606_v29 = vpop.eup %605  ;;  %v287_v30 = vadd.f32 %v604_v28, %v602_v27  ;;  %v289_v35 = vsel %vm288_vm1, %v604_v28, %v280_v34 }
  0x71   : > { %v608_v31 = vpop.eup %607  ;;  %v298_v36 = vsel %vm297_vm2, %v606_v29, %v289_v35 }
  0x72   : > { %v296_v32 = vadd.f32 %v606_v29, %v287_v30  ;;  %v307_v37 = vsel %vm306_vm3, %v608_v31, %v298_v36 }
  0x74   : > { %v305_v33 = vadd.f32 %v608_v31, %v296_v32 }
  0x76   : > { %609 = vrcp.f32 %v305_v33 }
  0x83   : > { %v610_v38 = vpop.eup %609 }
  0x84   : > { %v312_v39 = vmul.f32 %v610_v38, %v307_v37 }
  0x86   : > { %v313_v40 = vadd.f32 1e-10, %v312_v39 }
  0x88   : > { %611 = vlog2.f32 %v313_v40  ;;  %v316_v41 = vsub.f32 1.0, %v313_v40 }
  0x8a   : > { %v317_v42 = vmul.f32 %v316_v41, %v316_v41 }
  0x95   : > { %v612_v43 = vpop.eup %611 }
  0x96   : > { %v315_v44 = vmul.f32 0.6931472, %v612_v43 }
  0x98   : > { %v319_v46 = vmul.f32 %v317_v42, %v315_v44 }
  0x9a   : > { %v320_v47 = vadd.f32 %v319_v46, %v318_v45 }
  0x9c   : > { %321 = vst [vmem:[#allocation2] sm:$0x3] %v320_v47 }
  0xa3   : > { %v328_v48 = vld [vmem:[#allocation2] sm:$0x3] }
  0xa4   : > { %v330_v50 = vsel %vm329_vm4, %v328_v48, 0.0 }
  0xa5   : > { %331 = vadd.xlane.f32.xlu0 %v330_v50 }
  0xa9   : > { %342 = vadd.xlane.f32.xlu0 %v341_v51 }
 0x12e   : > { %v332_v52 = vpop.xlane.xlu0 %331 }
 0x12f   : > { %v333_v53 = vrot.slane %v332_v52, 4 }
 0x131   : > { %v334_v54 = vadd.f32 %v333_v53, %v332_v52 }
 0x132   : > { %v343_v55 = vpop.xlane.xlu0 %342 }
 0x133   : > { %v335_v56 = vrot.slane %v334_v54, 2  ;;  %v344_v57 = vrot.slane %v343_v55, 4 }
 0x135   : > { %v345_v58 = vadd.f32 %v344_v57, %v343_v55  ;;  %v336_v59 = vadd.f32 %v335_v56, %v334_v54 }
 0x137   : > { %v346_v60 = vrot.slane %v345_v58, 2  ;;  %v337_v61 = vrot.slane %v336_v59, 1 }
 0x139   : > { %v347_v62 = vadd.f32 %v346_v60, %v345_v58  ;;  %v338_v63 = vadd.f32 %v337_v61, %v336_v59 }
 0x13b   : > { %516 = vpush %v338_v63  ;;  %v348_v0 = vrot.slane %v347_v62, 1 }
 0x13d   : > { %v349_v1 = vadd.f32 %v348_v0, %v347_v62 }
 0x13f   : > { %518 = vpush %v349_v1 }
 0x16c   : > { %s517_s18 = spop %516 }
 0x16d   : > { %v357_v5 = vstv %s517_s18 }
 0x170   : > { %s519_s27 = spop %518 }
 0x171   : > { %v355_v4 = vstv %s519_s27 }
 0x172   : > { %v356_v6 = vsel %vm354_vm5, %v355_v4, 0.0 }
 0x173   : > { %v358_v7 = vsel %vm353_vm6, %v357_v5, %v356_v6 }
 0x174   : > { %359 = vst [vmem:[%s257_s19] sm:$0xff] %v358_v7 }
 0x175   : > { %697 = shalt.err (!%p694_p1)
}
 0x176   : > { %s698_s0 = scalar_lea.hbm %s970_s28, 128  ;;  %s702_s30 = scalar_lea.hbm %s1015_s3, 256 }
 0x177   : > { %p699_p8 = scmp.ne.s32.totalorder %s970_s28, %s698_s0  ;;  %p703_p6 = scmp.lt.s32.totalorder %s970_s28, %s1015_s3 }
 0x178   : > { %p704_p10 = scmp.lt.s32.totalorder %s702_s30, %s698_s0 }
 0x179   : > { %p700_p13 = pnand %p699_p8, %p1033_p7 }
 0x17a   : > { %p705_p5 = por %p704_p10, %p703_p6 }
 0x17b   : > { %p701_p4 = pneg %p700_p13 }
 0x17d   : > { %p706_p3 = pnand %p705_p5, %p701_p4 }
 0x17f   : > { %709 = shalt.err (!%p706_p3)
}
 0x180   : > { %528 = dma.vmem_to_hbm [thread:$0]  (%p1033_p7), %s375_s22, 128, %s970_s28, %s361_s15  }
 0x181 PF: > { %s386_s20 = sand.u32 1, %s752_s12   ;;  %p1034_p12 = scmp.ne.s32.totalorder %s1024_s25, 0 }
 0x182   : > { %p1035_p2 = scmp.ge.s32.totalorder %s772_s17, 2  ;;  %s387_s23 = scalar_lea.sflag [#allocation6], %s386_s20 }
 0x184   : > { %p542_p9 = pnand %p1035_p2, %p1034_p12 }
 0x186   : > { %p543_p11 = pneg %p542_p9 }
 0x188   : > { %747 = dma.done.wait (%p543_p11), %s387_s23, 128  }
 0x189   : > { %749 = vsyncadd (%p543_p11), %s387_s23, 4294967168  ;;  %s23_s17 = sadd.s32 1, %s772_s17   ;;  %s1036_s24 = sld [smem:[#allocation17_spill]] }
 0x18a   : > { %p20_p0 = scmp.ge.s32.totalorder %s23_s17, 4   ;;  %s1037_s10 = sld [smem:[#allocation16_spill]] }
 0x18b   : > { %s1038_s12 = smov %s756_s13  ;;  %s1039_s13 = smov %s760_s14 }
 0x18c   : > { %s1041_s15 = smov %s768_s16  ;;  %22 = sbr.rel (!%p20_p0) target bundleno = 12 (0xc), region = 106 }
 0x18f   : > { %s1040_s14 = smov %s1036_s24 }
 0x190   : > { %s1042_s16 = smov %s1037_s10 }
 0x191   :  { %392 = vsyncpa [#allocation5], 1 }
 0x192   :  { %394 = vsyncpa [#allocation5 + $0x1], 1 }
 0x193   :  { %395 = vsyncpa [#allocation9], 1 }
 0x194   :  { %397 = vsyncpa [#allocation9 + $0x1], 1 }
 0x195   :  { %398 = vsyncpa [#allocation6], 1 }
 0x196   :  { %400 = vsyncpa [#allocation6 + $0x1], 1 }
 0x197   :  { %401 = vsyncpa [#allocation7], 1 }
 0x198   :  { %403 = vsyncpa [#allocation7 + $0x1], 1 }

</bundles_post_ra>
